<compile_context>
chip_gen: v5e
topology: v5e:2x2
jax: 0.10.0
libtpu: 0.0.40
codegen_flags: <defaults>
</compile_context>

<pallas_src>
import math
import functools

import jax
import jax.numpy as jnp
from jax.experimental import pallas as pl
from jax.experimental.pallas import tpu as pltpu


def _margin_kernel(labels_ref, logits_ref, out_ref, *,
                   s, m1, m2, m3, cos_m, sin_m, theta, sinmm,
                   easy_margin, threshold, tile_c):
    j = pl.program_id(1)

    x = logits_ref[...]                                   # (TN, TC) native dtype
    tn, tc = x.shape
    lab = labels_ref[...]                                 # (TN, 1) int32, -1 == skip

    # Global column index of every lane in this tile.
    col = jax.lax.broadcasted_iota(jnp.int32, (tn, tc), 1) + j * tile_c

    # Per-row target logit via a one-hot masked cross-lane reduce (XLU).
    # col >= 0, so a -1 label never matches; rows whose target column lives
    # outside this tile give t = 0, and that value is never selected below.
    t = jnp.sum(jnp.where(col == lab, x, jnp.zeros_like(x)),
                axis=-1, keepdims=True).astype(jnp.float32)   # (TN, 1)

    # Inter-class filtering (static branch: only emitted when threshold > 0).
    # The target column itself is never filtered, so t above is unaffected.
    if threshold > 0:
        dirty = (x > threshold) & (col != lab)
        x = jnp.where(dirty, jnp.zeros_like(x), x)

    if (m1 == 1.0 and m2 > 0.0) or (m1 == 0.5 and m2 > 0.0 and m3 > 0.0):
        # clamp keeps sqrt finite if a low-precision cosine drifts outside [-1, 1]
        sin_theta = jnp.sqrt(jnp.maximum(1.0 - t * t, 0.0))
        cos_theta_m = t * cos_m - sin_theta * sin_m
        if easy_margin:
            final = jnp.where(t > 0.0, cos_theta_m, t)
        else:
            final = jnp.where(t > theta, cos_theta_m, t - sinmm)
        if m1 == 0.5:
            final = final - m3
    elif m1 == 0.0 and m3 > 0.0:
        final = t - m3
    else:
        raise ValueError("unsupported margin configuration")

    final = final.astype(x.dtype)                         # (TN, 1) broadcasts over lanes
    out = jnp.where(col == lab, final, x) * jnp.asarray(s, dtype=x.dtype)
    out_ref[...] = out.astype(out_ref.dtype)


def _round_up(x, m):
    return ((x + m - 1) // m) * m


def _choose_tiles(N, C, itemsize):
    """Byte-targeted streaming tiles (~2 MiB/block), lane-dense, dtype-aware."""
    sub = {4: 8, 2: 16, 1: 32}.get(itemsize, 8)
    target_block_bytes = 2 << 20
    row_bytes = C * itemsize

    # Full-row blocks (1-D grid over rows) whenever a row is moderate:
    # lane-dense unmasked stores, margin math / masked reduce once per row.
    if row_bytes <= (32 << 10):
        tile_c = C
    else:
        # ~16 KiB of lanes per row-chunk, multiple of 128.
        tile_c = max(128, ((16 << 10) // itemsize) // 128 * 128)
        if tile_c >= C:
            tile_c = C

    tile_n = (target_block_bytes // (tile_c * itemsize)) // sub * sub
    tile_n = max(sub, tile_n)
    if tile_n >= N:
        tile_n = N

    # v7x megacore: make sure a ("parallel", "parallel") grid has >= 2 blocks
    # so both TensorCores get work even on small problems.
    if pl.cdiv(N, tile_n) * pl.cdiv(C, tile_c) == 1:
        if N > sub:
            tile_n = _round_up(pl.cdiv(N, 2), sub)
        elif C > 128:
            tile_c = _round_up(pl.cdiv(C, 2), 128)
    return tile_n, tile_c


def _vmem_cap_bytes():
    try:
        return int(pltpu.get_tpu_info().vmem_capacity_bytes)
    except Exception:
        return 64 << 20   # conservative fallback (v7x per-TensorCore VMEM)


class CombinedMarginLoss:
    def __init__(self, s, m1, m2, m3, interclass_filtering_threshold=0,
                 inplace=True):
        self.s = float(s)
        self.m1 = float(m1)
        self.m2 = float(m2)
        self.m3 = float(m3)
        self.interclass_filtering_threshold = float(interclass_filtering_threshold)
        self.cos_m = math.cos(self.m2)
        self.sin_m = math.sin(self.m2)
        self.theta = math.cos(math.pi - self.m2)
        self.sinmm = math.sin(math.pi - self.m2) * self.m2
        self.easy_margin = False
        # When True the output aliases the logits input buffer (free when the
        # caller donates logits; XLA inserts a copy otherwise).
        self.inplace = inplace

    def __call__(self, logits, labels, *, tile_n=None, tile_c=None):
        N, C = logits.shape
        itemsize = jnp.dtype(logits.dtype).itemsize

        if tile_n is None or tile_c is None:
            auto_n, auto_c = _choose_tiles(N, C, itemsize)
            if tile_n is None:
                tile_n = auto_n
            if tile_c is None:
                tile_c = auto_c
        tile_n = min(int(tile_n), N)
        tile_c = min(int(tile_c), C)
        assert tile_n == N or tile_n % 8 == 0, "tile_n must be a multiple of 8 or == N"
        assert tile_c == C or tile_c % 128 == 0, "tile_c must be a multiple of 128 or == C"

        labels2d = labels.astype(jnp.int32).reshape(N, 1)

        kernel = functools.partial(
            _margin_kernel,
            s=self.s, m1=self.m1, m2=self.m2, m3=self.m3,
            cos_m=self.cos_m, sin_m=self.sin_m,
            theta=self.theta, sinmm=self.sinmm,
            easy_margin=self.easy_margin,
            threshold=self.interclass_filtering_threshold,
            tile_c=tile_c,
        )

        # VMEM budget: logits in + out, double-buffered, plus the lane-padded
        # per-tile labels block and 32-bit full-tile temporaries + headroom.
        block_bytes = tile_n * tile_c * itemsize
        label_bytes = tile_n * 128 * 4            # (TN, 1) i32 pads lanes to 128
        temp_bytes = 2 * tile_n * tile_c * 4      # iota + masks / f32 intermediates
        need = 2 * (2 * block_bytes) + 2 * label_bytes + temp_bytes + (4 << 20)
        cap = int(0.8 * _vmem_cap_bytes())        # headroom for Mosaic internal scratch
        vmem_limit = max(min(need, cap), 16 << 20)

        grid = (pl.cdiv(N, tile_n), pl.cdiv(C, tile_c))
        return pl.pallas_call(
            kernel,
            out_shape=jax.ShapeDtypeStruct((N, C), logits.dtype),
            grid_spec=pltpu.PrefetchScalarGridSpec(
                num_scalar_prefetch=0,
                grid=grid,
                in_specs=[
                    # labels: tiny per-row-tile block; DMA hidden under logits DMA
                    pl.BlockSpec((tile_n, 1), lambda i, j: (i, 0)),
                    pl.BlockSpec((tile_n, tile_c), lambda i, j: (i, j)),
                ],
                out_specs=pl.BlockSpec((tile_n, tile_c), lambda i, j: (i, j)),
            ),
            input_output_aliases=({1: 0} if self.inplace else {}),
            compiler_params=pltpu.CompilerParams(
                dimension_semantics=("parallel", "parallel"),
                vmem_limit_bytes=vmem_limit),
        )(labels2d, logits)


def _reference(loss, logits, labels):
    """Pure-JAX reference mirroring the PyTorch forward."""
    N, C = logits.shape
    is_pos = labels != -1
    one_hot = (jnp.arange(C)[None, :] == labels[:, None]) & is_pos[:, None]
    x = logits.astype(jnp.float32)
    if loss.interclass_filtering_threshold > 0:
        dirty = (x > loss.interclass_filtering_threshold) & (~one_hot)
        x = jnp.where(dirty, 0.0, x)
    t = x
    if (loss.m1 == 1.0 and loss.m2 > 0.0) or \
       (loss.m1 == 0.5 and loss.m2 > 0.0 and loss.m3 > 0.0):
        sin_theta = jnp.sqrt(jnp.maximum(1.0 - t * t, 0.0))
        cos_theta_m = t * loss.cos_m - sin_theta * loss.sin_m
        final = jnp.where(t > loss.theta, cos_theta_m, t - loss.sinmm)
        if loss.m1 == 0.5:
            final = final - loss.m3
    elif loss.m1 == 0.0 and loss.m3 > 0.0:
        final = t - loss.m3
    else:
        raise ValueError("unsupported margin configuration")
    return (jnp.where(one_hot, final, x) * loss.s).astype(logits.dtype)


if __name__ == "__main__":
    key = jax.random.PRNGKey(0)
    k1, k2, k3 = jax.random.split(key, 3)

    N, C = 64, 512
    # Logits are cosine similarities in [-1, 1].
    logits = jax.random.uniform(k1, (N, C), dtype=jnp.float32,
                                minval=-1.0, maxval=1.0)
    labels = jax.random.randint(k2, (N,), 0, C, dtype=jnp.int32)
    # Mark a few rows as "no label" (-1), as the module supports.
    drop = jax.random.bernoulli(k3, 0.25, (N,))
    labels = jnp.where(drop, -1, labels)

    configs = [
        # ArcFace: s=64, m1=1.0, m2=0.5, m3=0.0
        ("arcface", CombinedMarginLoss(64.0, 1.0, 0.5, 0.0)),
        # CosFace: s=64, m1=0.0, m2=0.0, m3=0.4
        ("cosface", CombinedMarginLoss(64.0, 0.0, 0.0, 0.4)),
        # Combined margin: m1=0.5, m2>0, m3>0
        ("combined", CombinedMarginLoss(64.0, 0.5, 0.3, 0.2)),
        # ArcFace + inter-class filtering
        ("arcface_filter", CombinedMarginLoss(64.0, 1.0, 0.5, 0.0,
                                              interclass_filtering_threshold=0.5)),
    ]

    for name, loss in configs:
        ref = _reference(loss, logits, labels)
        # Auto (byte-targeted, >= 2 parallel blocks) tiles. Pass a copy because
        # in-place aliasing is enabled and we reuse `logits` across configs.
        out_auto = jax.block_until_ready(loss(jnp.copy(logits), labels))
        # Explicit small tiles — exercises the multi-tile 2-D grid path.
        out_small = jax.block_until_ready(
            loss(jnp.copy(logits), labels, tile_n=16, tile_c=128))
        assert out_auto.shape == (N, C) and out_auto.dtype == logits.dtype
        assert jnp.allclose(out_auto, ref, atol=1e-5, rtol=1e-5), \
            f"{name}: auto-tile mismatch vs reference"
        assert jnp.allclose(out_small, ref, atol=1e-5, rtol=1e-5), \
            f"{name}: small-tile mismatch vs reference"

    # Ragged shapes (N not a multiple of 8, C not a multiple of 128) exercise
    # the cdiv grid with partial edge blocks.
    N2, C2 = 50, 500
    logits2 = jax.random.uniform(k1, (N2, C2), dtype=jnp.float32,
                                 minval=-1.0, maxval=1.0)
    labels2 = jax.random.randint(k2, (N2,), 0, C2, dtype=jnp.int32)
    labels2 = jnp.where(jax.random.bernoulli(k3, 0.25, (N2,)), -1, labels2)
    loss_r = CombinedMarginLoss(64.0, 1.0, 0.5, 0.0)
    ref2 = _reference(loss_r, logits2, labels2)
    out2 = jax.block_until_ready(loss_r(jnp.copy(logits2), labels2))
    assert jnp.allclose(out2, ref2, atol=1e-5, rtol=1e-5), \
        "ragged-shape mismatch vs reference"

    print("KERNEL_OK")
</pallas_src>

<mosaic_0001>
module attributes {stable_mosaic.version = 11 : i64} {
  func.func @_margin_kernel(%arg0: i32, %arg1: i32, %arg2: memref<32x1xi32, #tpu.memory_space<vmem>>, %arg3: memref<32x512xf32, #tpu.memory_space<vmem>>, %arg4: memref<32x512xf32, #tpu.memory_space<vmem>>) attributes {dimension_semantics = [#tpu.dimension_semantics<parallel>, #tpu.dimension_semantics<parallel>], iteration_bounds = array<i64: 2, 1>, scalar_prefetch = 0 : i64, scratch_operands = 0 : i64, tpu.core_type = #tpu.core_type<tc>, window_params = [{transform_indices = @transform_0, window_bounds = array<i64: 32, 1>}, {transform_indices = @transform_1, window_bounds = array<i64: 32, 512>}, {transform_indices = @transform_2, window_bounds = array<i64: 32, 512>}]} {
    %c0 = arith.constant 0 : index
    %c0_0 = arith.constant 0 : index
    %0 = vector.load %arg3[%c0, %c0_0] : memref<32x512xf32, #tpu.memory_space<vmem>>, vector<32x512xf32>
    %c0_1 = arith.constant 0 : index
    %c0_2 = arith.constant 0 : index
    %1 = vector.load %arg2[%c0_1, %c0_2] : memref<32x1xi32, #tpu.memory_space<vmem>>, vector<32x1xi32>
    %2 = tpu.iota {dimensions = array<i32: 1>} : vector<32x512xi32>
    %c512_i32 = arith.constant 512 : i32
    %3 = arith.muli %arg1, %c512_i32 : i32
    %4 = vector.broadcast %3 : i32 to vector<32x512xi32>
    %5 = arith.addi %2, %4 : vector<32x512xi32>
    %6 = vector.broadcast %1 : vector<32x1xi32> to vector<32x512xi32>
    %7 = arith.cmpi eq, %5, %6 : vector<32x512xi32>
    %cst = arith.constant 0.000000e+00 : f32
    %8 = vector.broadcast %cst : f32 to vector<32x512xf32>
    %9 = arith.select %7, %0, %8 : vector<32x512xi1>, vector<32x512xf32>
    %cst_3 = arith.constant dense<0.000000e+00> : vector<32xf32>
    %10 = vector.multi_reduction <add>, %9, %cst_3 [1] : vector<32x512xf32> to vector<32xf32>
    %11 = vector.shape_cast %10 : vector<32xf32> to vector<32x1xf32>
    %12 = arith.mulf %11, %11 : vector<32x1xf32>
    %cst_4 = arith.constant 1.000000e+00 : f32
    %13 = vector.broadcast %cst_4 : f32 to vector<32x1xf32>
    %14 = arith.subf %13, %12 : vector<32x1xf32>
    %cst_5 = arith.constant 0.000000e+00 : f32
    %15 = vector.broadcast %cst_5 : f32 to vector<32x1xf32>
    %16 = arith.maximumf %14, %15 : vector<32x1xf32>
    %17 = math.sqrt %16 : vector<32x1xf32>
    %cst_6 = arith.constant 0.87758255 : f32
    %18 = vector.broadcast %cst_6 : f32 to vector<32x1xf32>
    %19 = arith.mulf %11, %18 : vector<32x1xf32>
    %cst_7 = arith.constant 0.47942555 : f32
    %20 = vector.broadcast %cst_7 : f32 to vector<32x1xf32>
    %21 = arith.mulf %17, %20 : vector<32x1xf32>
    %22 = arith.subf %19, %21 : vector<32x1xf32>
    %cst_8 = arith.constant -0.87758255 : f32
    %23 = vector.broadcast %cst_8 : f32 to vector<32x1xf32>
    %24 = arith.cmpf ogt, %11, %23 : vector<32x1xf32>
    %cst_9 = arith.constant 0.239712775 : f32
    %25 = vector.broadcast %cst_9 : f32 to vector<32x1xf32>
    %26 = arith.subf %11, %25 : vector<32x1xf32>
    %27 = arith.select %24, %22, %26 : vector<32x1xi1>, vector<32x1xf32>
    %28 = vector.broadcast %1 : vector<32x1xi32> to vector<32x512xi32>
    %29 = arith.cmpi eq, %5, %28 : vector<32x512xi32>
    %30 = vector.shape_cast %27 : vector<32x1xf32> to vector<32x1xf32>
    %31 = vector.broadcast %30 : vector<32x1xf32> to vector<32x512xf32>
    %32 = arith.select %29, %31, %0 : vector<32x512xi1>, vector<32x512xf32>
    %cst_10 = arith.constant 6.400000e+01 : f32
    %33 = vector.broadcast %cst_10 : f32 to vector<32x512xf32>
    %34 = arith.mulf %32, %33 : vector<32x512xf32>
    %c0_11 = arith.constant 0 : index
    %c0_12 = arith.constant 0 : index
    %35 = vector.load %arg4[%c0_11, %c0_12] : memref<32x512xf32, #tpu.memory_space<vmem>>, vector<32x512xf32>
    tpu.vector_store %arg4[%c0_11, %c0_12], %34 {strides = array<i32>} : memref<32x512xf32, #tpu.memory_space<vmem>>, vector<32x512xf32>,
    return
  }
  func.func @transform_0(%arg0: i32, %arg1: i32) -> (i32, i32) {
    %c0_i32 = arith.constant 0 : i32
    %c0_i32_0 = arith.constant 0 : i32
    return %arg0, %c0_i32 : i32, i32
  }
  func.func @transform_1(%arg0: i32, %arg1: i32) -> (i32, i32) {
    %c0_i32 = arith.constant 0 : i32
    return %arg0, %arg1 : i32, i32
  }
  func.func @transform_2(%arg0: i32, %arg1: i32) -> (i32, i32) {
    %c0_i32 = arith.constant 0 : i32
    return %arg0, %arg1 : i32, i32
  }
}

</mosaic_0001>

<bundles_post_ra>
// kernel: tpu_custom_call.1
= control target key start
LH: loop header
LB: loop body
LE: loop exit
PB: predicated region body
PF: predicated region fallthrough
CT: control target
= control target key end

     0   :  { %7 = vsyncpa [#allocation3], 0  ;;  %s1209_s0 = inlined_call_operand.vmem [shape: s32[64,1], index: 0, kind: input, shape index: {}]   ;;  %s1210_s1 = inlined_call_operand.hbm [shape: f32[64,512], index: 1, kind: input, shape index: {}, may-alias: {1,2}]   ;;  %s1211_s2 = inlined_call_operand.hbm [shape: f32[64,512], index: 2, kind: output, shape index: {}, may-alias: {1,2}]  }
   0x1   :  { %9 = vsyncpa [#allocation3 + $0x1], 0 }
   0x2   :  { %10 = vsyncpa [#allocation4], 0 }
   0x3   :  { %12 = vsyncpa [#allocation4 + $0x1], 0  ;;  %s792_s9 = smov 0   ;;  %s794_s10 = smov 0  }
   0x4   :  { %s796_s11 = smov 0   ;;  %s798_s12 = smov 0  }
   0x5   :  { %s800_s13 = smov 0   ;;  %s802_s14 = smov 0  }
   0x6 LB: > { %s554_s15 = sadd.s32 4294967295, %s770_s14   ;;  %s555_s16 = sadd.s32 4294967294, %s770_s14   ;;  %s770_s14 = sphi %s802_s14, %s18_s14   ;;  %s766_s13 = sphi %s800_s13, %s1230_s13   ;;  %s762_s12 = sphi %s798_s12, %s1229_s12   ;;  %s758_s11 = sphi %s796_s11, %s1228_s11   ;;  %s754_s10 = sphi %s794_s10, %s1227_s10   ;;  %s750_s9 = sphi %s792_s9, %s1226_s9  }
   0x7   : > { %s30_s17 = sadd.s32 1, %s766_s13  ;;  %s65_s18 = sadd.s32 1, %s758_s11 }
   0x8   : > { %p32_p0 = scmp.ge.s32.totalorder %s30_s17, 2  ;;  %p72_p1 = scmp.ne.s32.totalorder %s758_s11, %s754_s10 }
   0x9   : > { %p73_p2 = scmp.eq.s32.totalorder %s770_s14, 0  ;;  %p78_p3 = scmp.ne.s32.totalorder %s754_s10, %s750_s9 }
   0xa   : > { %s1232_s17 = smov (%p32_p0, %s30_s17), 0  ;;  %p79_p5 = scmp.eq.s32.totalorder %s554_s15, 0 }
   0xb   : > { %p833_p4 = por %p73_p2, %p72_p1  ;;  %s60_s20 = ssub.s32 %s766_s13, %s1232_s17 }
   0xc   : > { %p104_p6 = scmp.eq.s32.totalorder %s554_s15, 1  ;;  %p63_p7 = scmp.eq.s32.totalorder %s60_s20, 0 }
   0xd   : > { %p839_p8 = por %p79_p5, %p78_p3  ;;  %p110_p10 = scmp.eq.s32.totalorder %s555_s16, 1 }
   0xe   : > { %p843_p9 = por %p104_p6, %p72_p1  ;;  %p557_p12 = scmp.ge.s32.totalorder %s770_s14, 2 }
   0xf   : > { %s848_s23 = scalar_select %p63_p7, %s758_s11, %s65_s18  }
  0x10   : > { %p850_p11 = por %p110_p10, %p78_p3  ;;  %p593_p13 = scmp.lt.s32.totalorder %s770_s14, 2 }
  0x11   : > { %s139_s25 = sand.u32 1, %s758_s11   ;;  %s578_s27 = sshll.u32 %s766_s13, 7 }
  0x12   : > { %s558_s26 = sshll.u32 %s139_s25, 7  ;;  %s151_s30 = scalar_lea.hbm %s1210_s1, %s578_s27 }
  0x13   : > { %s143_s3 = scalar_lea.vmem [#allocation2], %s558_s26  ;;  %s152_s5 = sshll.u32 %s151_s30, 4  ;;  %s153_s5 = int_to_ptr.hbm [resolvable:$true] %s152_s5 }
  0x14   : > { %s154_s4 = sshll.u32 %s143_s3, 4  ;;  %p586_p0 = pnand %p593_p13, %p833_p4  ;;  %s155_s4 = int_to_ptr.vmem [resolvable:$true] %s154_s4 }
  0x15   : > { %p562_p1 = scmp.ge.s32.totalorder %s770_s14, 1  ;;  %s140_s6 = scalar_lea.sflag [#allocation3], %s139_s25 }
  0x16   : > { %s772_s7 = smov 512   ;;  %s773_s8 = smov 32  }
  0x17   : > { %588 = dma.hbm_to_vmem [thread:$0]  (!%p586_p0), %s153_s5, 2048, %s155_s4, %s140_s6, %s772_s7, %s772_s7, %s773_s8  }
  0x18   : > { %p162_p2 = scmp.lt.s32.totalorder %s770_s14, 3 }
  0x1a   : > { %p163_p3 = pnand %p562_p1, %p162_p2 }
  0x1b   : > { %s866_s15 = sand.u32 (!%p163_p3), 1, %s754_s10  }
  0x1c   : > { %166 = sbr.rel (%p163_p3) target bundleno = 339 (0x153), region = 28  ;;  %s563_s16 = sshll.u32 (!%p163_p3), %s866_s15, 7 }
  0x1d   : > { %s169_s18 = scalar_lea.sflag (!%p163_p3), [#allocation3], %s866_s15  ;;  %s872_s19 = scalar_lea.vmem (!%p163_p3), [#allocation2], %s563_s16 }
  0x21   : > { %741 = dma.done.wait (%p839_p8), %s169_s18, 2048  }
  0x22   : > { %743 = vsyncadd (%p839_p8), %s169_s18, 4294965248  ;;  %s565_s20 = sshll.u32 %s762_s12, 2  ;;  %v774_v0 = vmov 0   ;;  %v229_v5 = vlaneseq  ;;  %v891_v9 = vld [vmem:[%s872_s19 + $0x40] sm:$0xff]  ;;  %v894_v10 = vld [vmem:[%s872_s19 + $0x48] sm:$0xff]  ;;  %s1086_s21 = scalar_lea.vmem [#allocation5], %s563_s16 }
  0x23   : > { %649 = vset.pattern.permute.xlu1 %v774_v0  ;;  %648 = vset.pattern.permute.xlu0 %v774_v0  ;;  %p200_p4 = scmp.lt.s32.totalorder %s565_s20, 7  ;;  %v912_v14 = vld [vmem:[%s872_s19 + $0x50] sm:$0xff]  ;;  %v915_v15 = vld [vmem:[%s872_s19] sm:$0xff]  ;;  %v918_v16 = vld [vmem:[%s872_s19 + $0x8] sm:$0xff]  ;;  %s580_s29 = sshll.u32 %s762_s12, 7 }
  0x24   : > { %v882_v6 = vand.u32 127, %v229_v5  ;;  %v931_v19 = vld [vmem:[%s872_s19 + $0x58] sm:$0xff]  ;;  %v936_v21 = vld [vmem:[%s872_s19 + $0x10] sm:$0xff]  ;;  %v966_v32 = vld [vmem:[%s872_s19 + $0x60] sm:$0xff]  ;;  %s451_s3 = scalar_lea.hbm %s1211_s2, %s580_s29  ;;  %s452_s4 = sshll.u32 %s1086_s21, 4  ;;  %s453_s4 = int_to_ptr.vmem [resolvable:$true] %s452_s4 }
  0x25   : > { %s1234_s20 = smov (!%p200_p4, %s565_s20), 7  ;;  %v953_v26 = vld [vmem:[%s872_s19 + $0x18] sm:$0xff]  ;;  %v977_v36 = vld [vmem:[%s872_s19 + $0x68] sm:$0xff]  ;;  %v988_v37 = vld [vmem:[%s872_s19 + $0x20] sm:$0xff]  ;;  %s454_s5 = sshll.u32 %s451_s3, 4  ;;  %s455_s5 = int_to_ptr.hbm [resolvable:$true] %s454_s5 }
  0x26   : > { %s566_s25 = sshll.u32 %s1234_s20, 3  ;;  %v885_v7 = vadd.s32 128, %v882_v6  ;;  %v888_v8 = vadd.s32 256, %v882_v6  ;;  %v897_v11 = vadd.s32 384, %v882_v6  ;;  %v991_v38 = vld [vmem:[%s872_s19 + $0x28] sm:$0xff]  ;;  %v994_v40 = vld [vmem:[%s872_s19 + $0x70] sm:$0xff] }
  0x27   : > { %s203_s28 = scalar_lea.vmem %s1209_s0, %s566_s25  ;;  %v1007_v43 = vld [vmem:[%s872_s19 + $0x30] sm:$0xff]  ;;  %v1012_v44 = vld [vmem:[%s872_s19 + $0x78] sm:$0xff]  ;;  %s437_s6 = scalar_lea.sflag [#allocation4], %s866_s15 }
  0x28   : > { %v227_v1 = vld [vmem:[%s203_s28 + $0x10] sm:$0xff]  ;;  %v225_v2 = vld [vmem:[%s203_s28] sm:$0xff]  ;;  %v228_v3 = vld [vmem:[%s203_s28 + $0x18] sm:$0xff]  ;;  %s702_s7 = sshra.s32 %s455_s5, 4  ;;  %s703_s7 = int_to_ptr.hbm [resolvable:$true] %s702_s7 }
  0x29   : > { %247 = vperm.xlu1 %649, %v227_v1   ;;  %241 = vperm.xlu0 %648, %v225_v2   ;;  %v226_v4 = vld [vmem:[%s203_s28 + $0x8] sm:$0xff]  ;;  %v1029_v49 = vld [vmem:[%s872_s19 + $0x38] sm:$0xff]  ;;  %s704_s8 = scalar_lea.hbm %s703_s7, 128  ;;  %s708_s19 = scalar_lea.hbm %s1211_s2, 256 }
  0x2a   : > { %p705_p5 = scmp.ne.s32.totalorder %s703_s7, %s704_s8  ;;  %p709_p8 = scmp.lt.s32.totalorder %s703_s7, %s1211_s2 }
  0x2b   : > { %p710_p10 = scmp.lt.s32.totalorder %s708_s19, %s704_s8 }
  0x2c   : > { %p706_p6 = pnand %p705_p5, %p843_p9 }
  0x2d   : > { %p711_p13 = por %p710_p10, %p709_p8 }
  0x2e   : > { %p707_p7 = pneg %p706_p6 }
  0x30   : > { %p712_p0 = pnand %p711_p13, %p707_p7 }
  0x31   : > { %250 = vperm.xlu1 %649, %v228_v3   ;;  %244 = vperm.xlu0 %648, %v226_v4  }
  0x9b   : > { %v899_v12 = vpop.permute.xlu1 %247  ;;  %v901_v13 = vpop.permute.xlu0 %241 }
  0x9c   : > { %vm260_vm0 = vcmp.eq.s32.totalorder %v882_v6, %v899_v12  ;;  %vm261_vm1 = vcmp.eq.s32.totalorder %v885_v7, %v899_v12  ;;  %vm252_vm2 = vcmp.eq.s32.totalorder %v882_v6, %v901_v13  ;;  %vm253_vm3 = vcmp.eq.s32.totalorder %v885_v7, %v901_v13 }
  0x9d   : > { %vm262_vm4 = vcmp.eq.s32.totalorder %v888_v8, %v899_v12  ;;  %v276_v17 = vsel %vm260_vm0, %v891_v9, 0.0  ;;  %v277_v18 = vsel %vm261_vm1, %v894_v10, 0.0  ;;  %vm263_vm5 = vcmp.eq.s32.totalorder %v897_v11, %v899_v12 }
  0x9e   : > { %v294_v20 = vadd.f32 %v277_v18, %v276_v17  ;;  %vm254_vm6 = vcmp.eq.s32.totalorder %v888_v8, %v901_v13  ;;  %v278_v22 = vsel %vm262_vm4, %v912_v14, 0.0  ;;  %v268_v23 = vsel %vm252_vm2, %v915_v15, 0.0 }
  0x9f   : > { %v269_v24 = vsel %vm253_vm3, %v918_v16, 0.0  ;;  %vm255_vm7 = vcmp.eq.s32.totalorder %v897_v11, %v901_v13  ;;  %v279_v28 = vsel %vm263_vm5, %v931_v19, 0.0  ;;  %v270_v29 = vsel %vm254_vm6, %v936_v21, 0.0 }
  0xa0   : > { %v295_v25 = vadd.f32 %v294_v20, %v278_v22  ;;  %v284_v27 = vadd.f32 %v269_v24, %v268_v23  ;;  %v271_v35 = vsel %vm255_vm7, %v953_v26, 0.0 }
  0xa2   : > { %v296_v30 = vadd.f32 %v295_v25, %v279_v28  ;;  %v285_v31 = vadd.f32 %v284_v27, %v270_v29 }
  0xa3   : > { %v968_v33 = vpop.permute.xlu1 %250  ;;  %v970_v34 = vpop.permute.xlu0 %244 }
  0xa4   : > { %vm264_vm8 = vcmp.eq.s32.totalorder %v882_v6, %v968_v33  ;;  %vm265_vm9 = vcmp.eq.s32.totalorder %v885_v7, %v968_v33  ;;  %vm1215_vm10 = vcmp.eq.s32.totalorder %v882_v6, %v970_v34  ;;  %vm1214_vm11 = vcmp.eq.s32.totalorder %v885_v7, %v970_v34  ;;  %297 = vadd.xlane.f32.xlu0 %v296_v30 }
  0xa5   : > { %v286_v39 = vadd.f32 %v285_v31, %v271_v35  ;;  %vm266_vm12 = vcmp.eq.s32.totalorder %v888_v8, %v968_v33  ;;  %v280_v41 = vsel %vm264_vm8, %v966_v32, 0.0  ;;  %v281_v42 = vsel %vm265_vm9, %v977_v36, 0.0 }
  0xa6   : > { %vm1213_vm13 = vcmp.eq.s32.totalorder %v888_v8, %v970_v34  ;;  %vm1216_vm14 = vcmp.eq.s32.totalorder %v897_v11, %v968_v33  ;;  %v299_v45 = vadd.f32 %v281_v42, %v280_v41  ;;  %v272_v46 = vsel %vm1215_vm10, %v988_v37, 0.0 }
  0xa7   : > { %287 = vadd.xlane.f32.xlu2 %v286_v39  ;;  %v273_v47 = vsel %vm1214_vm11, %v991_v38, 0.0  ;;  %v282_v48 = vsel %vm266_vm12, %v994_v40, 0.0  ;;  %vm1212_vm15 = vcmp.eq.s32.totalorder %v897_v11, %v970_v34  ;;  %v274_v52 = vsel %vm1213_vm13, %v1007_v43, 0.0 }
  0xa8   : > { %v289_v50 = vadd.f32 %v273_v47, %v272_v46  ;;  %v300_v51 = vadd.f32 %v299_v45, %v282_v48  ;;  %v283_v53 = vsel %vm1216_vm14, %v1012_v44, 0.0  ;;  %v275_v56 = vsel %vm1212_vm15, %v1029_v49, 0.0 }
  0xaa   : > { %v290_v54 = vadd.f32 %v289_v50, %v274_v52  ;;  %v301_v55 = vadd.f32 %v300_v51, %v283_v53 }
  0xac   : > { %v291_v57 = vadd.f32 %v290_v54, %v275_v56  ;;  %302 = vadd.xlane.f32.xlu1 %v301_v55 }
  0xaf   : > { %292 = vadd.xlane.f32.xlu2 %v291_v57 }
 0x117   : > { %v298_v58 = vpop.xlane.xlu0 %297 }
 0x118   : > { %v306_v59 = vmul.f32 %v298_v58, %v298_v58  ;;  %v366_v55 = vmul.f32 0.87758255, %v298_v58  ;;  %vm378_vm14 = vcmp.gt.f32.partialorder %v298_v58, -0.87758255 }
 0x11a   : > { %v310_v60 = vsub.f32 1.0, %v306_v59  ;;  %v1045_v61 = vpop.xlane.xlu2 %287 }
 0x11b   : > { %v304_v62 = vmul.f32 %v1045_v61, %v1045_v61 }
 0x11c   : > { %v314_v63 = vmax.f32 %v310_v60, 0.0 }
 0x11d   : > { %v308_v0 = vsub.f32 1.0, %v304_v62 }
 0x11e   : > { %650 = vrsqrt.f32 %v314_v63  ;;  %vm347_vm15 = vcmp.eq.f32.partialorder %v314_v63, inf  ;;  %v350_v48 = vand.u32 2147483648, %v314_v63  ;;  %vm349_vm13 = vcmp.eq.f32.partialorder %v314_v63, 0.0 }
 0x11f   : > { %v312_v1 = vmax.f32 %v308_v0, 0.0  ;;  %v1049_v2 = vpop.xlane.xlu1 %302 }
 0x120   : > { %v307_v3 = vmul.f32 %v1049_v2, %v1049_v2  ;;  %v367_v13 = vmul.f32 0.87758255, %v1049_v2 }
 0x121   : > { %652 = vrsqrt.f32 %v312_v1  ;;  %vm323_vm11 = vcmp.eq.f32.partialorder %v312_v1, inf  ;;  %v326_v60 = vand.u32 2147483648, %v312_v1  ;;  %vm325_vm10 = vcmp.eq.f32.partialorder %v312_v1, 0.0 }
 0x122   : > { %v1053_v4 = vpop.xlane.xlu2 %292  ;;  %v311_v18 = vsub.f32 1.0, %v307_v3 }
 0x123   : > { %v305_v5 = vmul.f32 %v1053_v4, %v1053_v4 }
 0x124   : > { %v651_v17 = vpop.eup %650  ;;  %v1057_v23 = vmax.f32 %v311_v18, 0.0 }
 0x125   : > { %v341_v20 = vmul.f32 %v651_v17, %v314_v63  ;;  %v309_v22 = vsub.f32 1.0, %v305_v5 }
 0x126   : > { %654 = vrsqrt.f32 %v1057_v23  ;;  %v362_v12 = vand.u32 2147483648, %v1057_v23 }
 0x127   : > { %v653_v24 = vpop.eup %652  ;;  %v342_v25 = vmul.f32 %v651_v17, %v341_v20  ;;  %v1059_v27 = vmax.f32 %v309_v22, 0.0 }
 0x128   : > { %v317_v28 = vmul.f32 %v653_v24, %v312_v1 }
 0x129   : > { %v343_v29 = vmul.f32 0.5, %v342_v25  ;;  %656 = vrsqrt.f32 %v1059_v27  ;;  %v364_v25 = vmul.f32 0.87758255, %v1045_v61 }
 0x12a   : > { %v318_v30 = vmul.f32 %v653_v24, %v317_v28 }
 0x12b   : > { %v344_v31 = vsub.f32 1.5, %v343_v29 }
 0x12c   : > { %v319_v35 = vmul.f32 0.5, %v318_v30  ;;  %v655_v41 = vpop.eup %654 }
 0x12d   : > { %v345_v39 = vmul.f32 %v651_v17, %v344_v31  ;;  %v353_v47 = vmul.f32 %v655_v41, %v1057_v23  ;;  %v569_v17 = vadd.f32 -0.23971277, %v298_v58 }
 0x12e   : > { %v320_v42 = vsub.f32 1.5, %v319_v35 }
 0x12f   : > { %v657_v45 = vpop.eup %656  ;;  %v346_v46 = vmul.f32 %v345_v39, %v314_v63  ;;  %v354_v53 = vmul.f32 %v655_v41, %v353_v47 }
 0x130   : > { %v321_v50 = vmul.f32 %v653_v24, %v320_v42  ;;  %v329_v51 = vmul.f32 %v657_v45, %v1059_v27 }
 0x131   : > { %v348_v52 = vsel %vm347_vm15, %v314_v63, %v346_v46  ;;  %v355_v62 = vmul.f32 0.5, %v354_v53  ;;  %v338_v53 = vand.u32 2147483648, %v1059_v27 }
 0x132   : > { %v351_v54 = vsel %vm349_vm13, %v350_v48, %v348_v52  ;;  %v322_v56 = vmul.f32 %v321_v50, %v312_v1  ;;  %v330_v57 = vmul.f32 %v657_v45, %v329_v51 }
 0x133   : > { %v370_v59 = vmul.f32 0.47942555, %v351_v54  ;;  %v356_v20 = vsub.f32 1.5, %v355_v62  ;;  %v568_v62 = vadd.f32 -0.23971277, %v1053_v4 }
 0x134   : > { %v324_v0 = vsel %vm323_vm11, %v312_v1, %v322_v56  ;;  %v331_v3 = vmul.f32 0.5, %v330_v57  ;;  %v365_v56 = vmul.f32 0.87758255, %v1053_v4  ;;  %vm1225_vm11 = vcmp.eq.s32.totalorder %v897_v11, %v970_v34 }
 0x135   : > { %v374_v5 = vsub.f32 %v366_v55, %v370_v59  ;;  %v327_v18 = vsel %vm325_vm10, %v326_v60, %v324_v0  ;;  %v357_v28 = vmul.f32 %v655_v41, %v356_v20  ;;  %v570_v60 = vadd.f32 -0.23971277, %v1049_v2 }
 0x136   : > { %v368_v22 = vmul.f32 0.47942555, %v327_v18  ;;  %v332_v24 = vsub.f32 1.5, %v331_v3  ;;  %vm1224_vm10 = vcmp.eq.s32.totalorder %v888_v8, %v970_v34 }
 0x137   : > { %v386_v63 = vsel %vm378_vm14, %v374_v5, %v569_v17  ;;  %v358_v46 = vmul.f32 %v357_v28, %v1057_v23 }
 0x138   : > { %v396_v29 = vsel %vm260_vm0, %v386_v63, %v891_v9  ;;  %v397_v1 = vsel %vm261_vm1, %v386_v63, %v894_v10  ;;  %v398_v58 = vsel %vm262_vm4, %v386_v63, %v912_v14  ;;  %v399_v30 = vsel %vm263_vm5, %v386_v63, %v931_v19 }
 0x139   : > { %v412_v31 = vmul.f32 64.0, %v396_v29  ;;  %v413_v35 = vmul.f32 64.0, %v397_v1  ;;  %v414_v39 = vmul.f32 64.0, %v398_v58  ;;  %v567_v9 = vadd.f32 -0.23971277, %v1045_v61 }
 0x13a   : > { %v415_v41 = vmul.f32 64.0, %v399_v30  ;;  %v372_v42 = vsub.f32 %v364_v25, %v368_v22  ;;  %v333_v10 = vmul.f32 %v657_v45, %v332_v24  ;;  %vm376_vm0 = vcmp.gt.f32.partialorder %v1045_v61, -0.87758255 }
 0x13b   : > { %428 = vst [vmem:[%s1086_s21 + $0x40] sm:$0xff] %v412_v31  ;;  %vm359_vm1 = vcmp.eq.f32.partialorder %v1057_v23, inf  ;;  %vm361_vm4 = vcmp.eq.f32.partialorder %v1057_v23, 0.0  ;;  %vm335_vm5 = vcmp.eq.f32.partialorder %v1059_v27, inf }
 0x13c   : > { %429 = vst [vmem:[%s1086_s21 + $0x48] sm:$0xff] %v413_v35  ;;  %v384_v14 = vsel %vm376_vm0, %v372_v42, %v567_v9  ;;  %v360_v19 = vsel %vm359_vm1, %v1057_v23, %v358_v46  ;;  %v334_v45 = vmul.f32 %v333_v10, %v1059_v27 }
 0x13d   : > { %430 = vst [vmem:[%s1086_s21 + $0x50] sm:$0xff] %v414_v39  ;;  %v388_v61 = vsel %vm252_vm2, %v384_v14, %v915_v15  ;;  %v389_v47 = vsel %vm253_vm3, %v384_v14, %v918_v16  ;;  %v390_v48 = vsel %vm254_vm6, %v384_v14, %v936_v21  ;;  %v391_v50 = vsel %vm255_vm7, %v384_v14, %v953_v26 }
 0x13e   : > { %431 = vst [vmem:[%s1086_s21 + $0x58] sm:$0xff] %v415_v41  ;;  %v404_v51 = vmul.f32 64.0, %v388_v61  ;;  %v405_v15 = vmul.f32 64.0, %v389_v47  ;;  %v406_v52 = vmul.f32 64.0, %v390_v48  ;;  %v407_v16 = vmul.f32 64.0, %v391_v50 }
 0x13f   : > { %v363_v54 = vsel %vm361_vm4, %v362_v12, %v360_v19  ;;  %v336_v21 = vsel %vm335_vm5, %v1059_v27, %v334_v45  ;;  %vm337_vm2 = vcmp.eq.f32.partialorder %v1059_v27, 0.0  ;;  %vm379_vm3 = vcmp.gt.f32.partialorder %v1049_v2, -0.87758255 }
 0x140   : > { %420 = vst [vmem:[%s1086_s21] sm:$0xff] %v404_v51  ;;  %v371_v26 = vmul.f32 0.47942555, %v363_v54  ;;  %v339_v55 = vsel %vm337_vm2, %v338_v53, %v336_v21  ;;  %vm1221_vm6 = vcmp.eq.s32.totalorder %v897_v11, %v968_v33  ;;  %vm377_vm7 = vcmp.gt.f32.partialorder %v1053_v4, -0.87758255 }
 0x141   : > { %421 = vst [vmem:[%s1086_s21 + $0x8] sm:$0xff] %v405_v15  ;;  %v369_v57 = vmul.f32 0.47942555, %v339_v55 }
 0x142   : > { %422 = vst [vmem:[%s1086_s21 + $0x10] sm:$0xff] %v406_v52  ;;  %v375_v59 = vsub.f32 %v367_v13, %v371_v26 }
 0x143   : > { %423 = vst [vmem:[%s1086_s21 + $0x18] sm:$0xff] %v407_v16  ;;  %v373_v23 = vsub.f32 %v365_v56, %v369_v57 }
 0x144   : > { %v387_v27 = vsel %vm379_vm3, %v375_v59, %v570_v60 }
 0x145   : > { %v400_v0 = vsel %vm264_vm8, %v387_v27, %v966_v32  ;;  %v401_v3 = vsel %vm265_vm9, %v387_v27, %v977_v36  ;;  %v402_v2 = vsel %vm266_vm12, %v387_v27, %v994_v40  ;;  %v403_v5 = vsel %vm1221_vm6, %v387_v27, %v1012_v44 }
 0x146   : > { %v416_v17 = vmul.f32 64.0, %v400_v0  ;;  %v417_v18 = vmul.f32 64.0, %v401_v3  ;;  %v418_v32 = vmul.f32 64.0, %v402_v2  ;;  %v419_v36 = vmul.f32 64.0, %v403_v5 }
 0x147   : > { %v385_v40 = vsel %vm377_vm7, %v373_v23, %v568_v62  ;;  %vm1222_vm8 = vcmp.eq.s32.totalorder %v882_v6, %v970_v34  ;;  %vm1223_vm9 = vcmp.eq.s32.totalorder %v885_v7, %v970_v34 }
 0x148   : > { %432 = vst [vmem:[%s1086_s21 + $0x60] sm:$0xff] %v416_v17  ;;  %v392_v33 = vsel %vm1222_vm8, %v385_v40, %v988_v37  ;;  %v393_v44 = vsel %vm1223_vm9, %v385_v40, %v991_v38  ;;  %v394_v4 = vsel %vm1224_vm10, %v385_v40, %v1007_v43  ;;  %v395_v20 = vsel %vm1225_vm11, %v385_v40, %v1029_v49 }
 0x149   : > { %433 = vst [vmem:[%s1086_s21 + $0x68] sm:$0xff] %v417_v18  ;;  %v408_v6 = vmul.f32 64.0, %v392_v33  ;;  %v409_v37 = vmul.f32 64.0, %v393_v44  ;;  %v410_v7 = vmul.f32 64.0, %v394_v4  ;;  %v411_v38 = vmul.f32 64.0, %v395_v20 }
 0x14a   : > { %434 = vst [vmem:[%s1086_s21 + $0x70] sm:$0xff] %v418_v32 }
 0x14b   : > { %435 = vst [vmem:[%s1086_s21 + $0x78] sm:$0xff] %v419_v36 }
 0x14c   : > { %424 = vst [vmem:[%s1086_s21 + $0x20] sm:$0xff] %v408_v6 }
 0x14d   : > { %425 = vst [vmem:[%s1086_s21 + $0x28] sm:$0xff] %v409_v37 }
 0x14e   : > { %426 = vst [vmem:[%s1086_s21 + $0x30] sm:$0xff] %v410_v7 }
 0x14f   : > { %427 = vst [vmem:[%s1086_s21 + $0x38] sm:$0xff] %v411_v38 }
 0x150   : > { %715 = shalt.err (!%p712_p0)
}
 0x151   : > { %s775_s15 = smov 512   ;;  %s776_s26 = smov 32  }
 0x152   : > { %583 = dma.vmem_to_hbm [thread:$0]  (%p843_p9), %s453_s4, 2048, %s455_s5, %s437_s6, %s775_s15, %s775_s15, %s776_s26  }
 0x153 PF: > { %s469_s27 = sand.u32 1, %s750_s9   ;;  %p590_p1 = pnand %p557_p12, %p850_p11 }
 0x154   : > { %s470_s28 = scalar_lea.sflag [#allocation4], %s469_s27 }
 0x155   : > { %p591_p2 = pneg %p590_p1 }
 0x157   : > { %745 = dma.done.wait (%p591_p2), %s470_s28, 2048  }
 0x158   : > { %747 = vsyncadd (%p591_p2), %s470_s28, 4294965248  ;;  %s18_s14 = sadd.s32 1, %s770_s14   ;;  %s1226_s9 = smov %s754_s10 }
 0x159   : > { %p15_p3 = scmp.ge.s32.totalorder %s18_s14, 4   ;;  %s1227_s10 = smov %s758_s11 }
 0x15a   : > { %s1228_s11 = smov %s848_s23  ;;  %s1229_s12 = smov %s766_s13 }
 0x15b   : > { %s1230_s13 = smov %s1232_s17  ;;  %17 = sbr.rel (!%p15_p3) target bundleno = 6 (0x6), region = 76 }
 0x160   :  { %476 = vsyncpa [#allocation3], 1 }
 0x161   :  { %478 = vsyncpa [#allocation3 + $0x1], 1 }
 0x162   :  { %479 = vsyncpa [#allocation4], 1 }
 0x163   :  { %481 = vsyncpa [#allocation4 + $0x1], 1 }

</bundles_post_ra>
